<compile_context>
chip_gen: v7x
topology: tpu7x:2x2x1
jax: 0.10.0
libtpu: 0.0.40
codegen_flags: <defaults>
</compile_context>

<pallas_src>
import numpy as np
import jax
import jax.numpy as jnp
from jax.experimental import pallas as pl
from jax.experimental.pallas import tpu as pltpu


def _round_up(v, m):
    return (v + m - 1) // m * m


def _min_fill(dtype):
    dtype = jnp.dtype(dtype)
    if jnp.issubdtype(dtype, jnp.floating):
        return float("-inf")
    return int(jnp.iinfo(dtype).min)


def _sublane_min(dtype):
    # Minimum sublane extent of the last-two block dims for this dtype's tiling:
    # (8,128) f32/i32, (16,128) bf16, (32,128) int8/fp8.
    return {4: 8, 2: 16, 1: 32}.get(jnp.dtype(dtype).itemsize, 8)


# ----------------------------------------------------------------------------
# Pallas kernel: segment max of x over clusters (nodes pre-sorted by cluster).
# ----------------------------------------------------------------------------
def _segment_max_kernel(tile_ref, blk_ref, first_ref, cl_ref, x_ref, out_ref):
    """One grid step = one flattened (cluster tile, node block) work item.
    Nodes are sorted by cluster id, so each tile only visits the few contiguous
    node blocks that can contain its members; the output block stays resident
    across those steps and doubles as the running-max accumulator."""
    s = pl.program_id(0)
    tc = out_ref.shape[0]
    fill = _min_fill(out_ref.dtype)

    @pl.when(first_ref[s] == 1)          # first node block of this cluster tile
    def _init():
        out_ref[...] = jnp.full(out_ref.shape, fill, out_ref.dtype)

    cl = cl_ref[...]                      # [NB, 1] int32; padded rows carry -1
    x = x_ref[...]                        # [NB, F_pad], input dtype end-to-end
    base = tile_ref[s] * tc
    rows = []
    for r in range(tc):                   # tc == sublane minimum (8 f32 / 16 bf16)
        m = cl == (base + r)                                        # [NB, 1]
        rows.append(jnp.max(jnp.where(m, x, fill), axis=0, keepdims=True))
    tile_max = jnp.concatenate(rows, axis=0)                        # [TC, F_pad]
    out_ref[...] = jnp.maximum(out_ref[...], tile_max)              # one full-block update


def pallas_segment_max(cl_sorted, x_sorted, num_clusters, *, tc=None, nb=None):
    """cl_sorted: [N] non-decreasing cluster ids (numpy), x_sorted: [N, F] rows sorted
    by cluster. Returns [num_clusters, F] per-cluster feature max (same dtype as x)."""
    cl_np = np.asarray(cl_sorted, dtype=np.int64)
    N, F = x_sorted.shape
    dtype = x_sorted.dtype

    sub_min = _sublane_min(dtype)
    tc = sub_min if tc is None else _round_up(max(int(tc), sub_min), sub_min)
    if nb is None:
        avg = -(-N // max(int(num_clusters), 1))       # ceil average cluster size
        nb = int(np.clip(_round_up(tc * avg, 32), 64, 512))
    else:
        nb = _round_up(max(int(nb), 32), 32)

    n_pad = _round_up(max(N, nb), nb)
    f_pad = _round_up(max(F, 128), 128)
    c_pad = _round_up(max(int(num_clusters), tc), tc)
    num_tiles = c_pad // tc

    # Node-row range of each cluster tile (nodes sorted by cluster), then flatten the
    # ragged (tile, node-block) space into a 1-D list of real work items so no grid
    # step is wasted on clamped tails.
    tile_bounds = np.arange(num_tiles + 1, dtype=np.int64) * tc
    row_bounds = np.searchsorted(cl_np, tile_bounds, side="left")
    row_start, row_end = row_bounds[:-1], row_bounds[1:]
    blk_first = row_start // nb
    blk_last = np.maximum((np.maximum(row_end, row_start + 1) - 1) // nb, blk_first)
    nblocks = (blk_last - blk_first + 1).astype(np.int64)
    num_steps = int(nblocks.sum())

    step_tile = np.repeat(np.arange(num_tiles, dtype=np.int64), nblocks)
    first_idx = np.cumsum(nblocks) - nblocks
    within = np.arange(num_steps, dtype=np.int64) - np.repeat(first_idx, nblocks)
    step_blk = np.repeat(blk_first, nblocks) + within
    step_is_first = np.zeros(num_steps, np.int64)
    step_is_first[first_idx] = 1

    cl_p = jnp.full((n_pad, 1), -1, jnp.int32).at[:N, 0].set(
        jnp.asarray(cl_np.astype(np.int32)))
    x_p = jnp.zeros((n_pad, f_pad), dtype).at[:N, :F].set(x_sorted)

    out = pl.pallas_call(
        _segment_max_kernel,
        out_shape=jax.ShapeDtypeStruct((c_pad, f_pad), dtype),
        grid_spec=pltpu.PrefetchScalarGridSpec(
            num_scalar_prefetch=3,
            grid=(num_steps,),
            in_specs=[
                pl.BlockSpec((nb, 1), lambda s, ts, bs, fs: (bs[s], 0)),
                pl.BlockSpec((nb, f_pad), lambda s, ts, bs, fs: (bs[s], 0)),
            ],
            out_specs=pl.BlockSpec((tc, f_pad), lambda s, ts, bs, fs: (ts[s], 0)),
        ),
        compiler_params=pltpu.CompilerParams(
            dimension_semantics=("arbitrary",),      # output block revisited across steps
            vmem_limit_bytes=32 * 1024 * 1024,
        ),
    )(jnp.asarray(step_tile, jnp.int32),
      jnp.asarray(step_blk, jnp.int32),
      jnp.asarray(step_is_first, jnp.int32),
      cl_p, x_p)

    return out[:num_clusters, :F]


# ----------------------------------------------------------------------------
# On-device (plain JAX) position mean: tiny, so not worth lane-padding in Pallas.
# ----------------------------------------------------------------------------
def segment_mean(values, segment_ids, num_segments):
    v32 = values.astype(jnp.float32)
    seg = jnp.asarray(segment_ids, jnp.int32)
    ssum = jnp.zeros((num_segments, values.shape[1]), jnp.float32).at[seg].add(v32)
    cnt = jnp.zeros((num_segments,), jnp.float32).at[seg].add(1.0)
    return (ssum / jnp.maximum(cnt, 1.0)[:, None]).astype(values.dtype)


# ----------------------------------------------------------------------------
# Host glue (dynamic shapes): voxel clustering, edge coarsening, batch pooling.
# ----------------------------------------------------------------------------
def voxel_grid_clusters(pos, batch, voxel_size):
    """Equivalent grouping to torch_cluster.voxel_grid + consecutive relabel."""
    pos_np = np.asarray(pos, dtype=np.float32)
    batch_np = np.asarray(batch, dtype=np.int64)
    start = pos_np.min(axis=0)
    coords = np.floor((pos_np - start) / float(voxel_size)).astype(np.int64)
    ncells = coords.max(axis=0) + 1
    raw = batch_np.copy()
    for d in range(pos_np.shape[1]):
        raw = raw * ncells[d] + coords[:, d]
    _, inv = np.unique(raw, return_inverse=True)
    num_clusters = int(inv.max()) + 1
    return inv.astype(np.int32), num_clusters


def coarsen_edges(edge_index, cluster, num_clusters):
    """Map edges to clusters, drop self-loops, coalesce (dedup)."""
    ei = np.asarray(edge_index, dtype=np.int64)
    cl = np.asarray(cluster, dtype=np.int64)
    row, col = cl[ei[0]], cl[ei[1]]
    keep = row != col
    eid = row[keep] * num_clusters + col[keep]
    eid = np.unique(eid)
    new_ei = np.stack([eid // num_clusters, eid % num_clusters]).astype(np.int32)
    return jnp.asarray(new_ei)


def pool_batch(batch, cluster, num_clusters):
    # Last-write-wins is safe: all nodes of a cluster share the same batch id
    # (the batch id is folded into the voxel key above).
    out = np.zeros((num_clusters,), dtype=np.int32)
    out[np.asarray(cluster)] = np.asarray(batch, dtype=np.int32)
    return jnp.asarray(out)


def cartesian_edge_attr(pos, edge_index):
    """T.Cartesian(cat=False, norm=True): relative pos scaled to [0, 1]."""
    rel = pos[edge_index[1]] - pos[edge_index[0]]
    max_val = jnp.maximum(jnp.max(jnp.abs(rel)), 1e-12)
    return rel / (2.0 * max_val) + 0.5


# ----------------------------------------------------------------------------
# Module analogue
# ----------------------------------------------------------------------------
class MaxPoolingPallas:
    def __init__(self, voxel_size, transform=None, tc=None, nb=None):
        self.voxel_size = voxel_size
        self.transform = transform  # None (default) or "cartesian"
        self.tc = tc
        self.nb = nb

    def __call__(self, x, pos, batch=None, edge_index=None, return_data_obj=True):
        assert edge_index is not None, "edge_index must not be None"
        x = jnp.asarray(x)
        pos = jnp.asarray(pos)
        if batch is None:
            batch = jnp.zeros((x.shape[0],), jnp.int32)
        # TODO(synk): voxel clustering / edge coalescing have dynamic output shapes and
        # run in host numpy, forcing a device->host sync before the Pallas call.
        cluster_np, num_clusters = voxel_grid_clusters(pos, batch, self.voxel_size)
        order = np.argsort(cluster_np, kind="stable").astype(np.int32)
        cl_sorted = cluster_np[order]
        x_sorted = jnp.take(x, jnp.asarray(order), axis=0)     # device-side gather

        x_pool = pallas_segment_max(cl_sorted, x_sorted, num_clusters,
                                    tc=self.tc, nb=self.nb)
        pos_pool = segment_mean(pos, cluster_np, num_clusters)
        batch_pool = pool_batch(batch, cluster_np, num_clusters)
        ei_pool = coarsen_edges(edge_index, cluster_np, num_clusters)
        edge_attr = None  # module default: transform=None -> edge_attr is None
        if self.transform == "cartesian":
            edge_attr = cartesian_edge_attr(pos_pool, ei_pool)
        data = dict(x=x_pool, pos=pos_pool, batch=batch_pool,
                    edge_index=ei_pool, edge_attr=edge_attr)
        if return_data_obj:
            return data
        return (x_pool, pos_pool, batch_pool, ei_pool, edge_attr)

    def __repr__(self):
        return f"{self.__class__.__name__}(voxel_size={self.voxel_size})"


if __name__ == "__main__":
    key = jax.random.PRNGKey(0)
    k1, k2, k3, k4 = jax.random.split(key, 4)

    # Small graph that still exercises multiple cluster tiles and node blocks.
    N, F, D, E = 200, 64, 3, 64
    x = jax.random.normal(k1, (N, F), dtype=jnp.float32)
    pos = jax.random.uniform(k2, (N, D), dtype=jnp.float32)
    batch = jnp.concatenate(
        [jnp.zeros(N // 2, jnp.int32), jnp.ones(N - N // 2, jnp.int32)])
    # random edges, each within its own graph (first / second half of the nodes)
    src = jax.random.randint(k3, (E,), 0, N // 2)
    dst = jax.random.randint(k4, (E,), 0, N // 2)
    offset = jnp.concatenate(
        [jnp.zeros(E // 2, jnp.int32), jnp.full((E - E // 2,), N // 2, jnp.int32)])
    edge_index = jnp.stack([src + offset, dst + offset]).astype(jnp.int32)

    pool = MaxPoolingPallas(voxel_size=0.25)
    out = pool(x, pos, batch=batch, edge_index=edge_index, return_data_obj=True)
    jax.block_until_ready((out["x"], out["pos"], out["batch"], out["edge_index"]))

    # Correctness check against a plain numpy reference (f32 path, tc=8).
    cluster_np, C = voxel_grid_clusters(pos, batch, 0.25)
    x_np = np.asarray(x)
    pos_np = np.asarray(pos)
    x_ref = np.stack([x_np[cluster_np == c].max(axis=0) for c in range(C)])
    pos_ref = np.stack([pos_np[cluster_np == c].mean(axis=0) for c in range(C)])
    np.testing.assert_allclose(np.asarray(out["x"]), x_ref, rtol=1e-6, atol=1e-6)
    np.testing.assert_allclose(np.asarray(out["pos"]), pos_ref, rtol=1e-5, atol=1e-5)

    # bf16 path exercises the (16, 128) output-block tiling branch (tc auto -> 16).
    xb = x.astype(jnp.bfloat16)
    out16 = MaxPoolingPallas(voxel_size=0.25)(xb, pos, batch=batch,
                                              edge_index=edge_index)
    jax.block_until_ready(out16["x"])
    xb32 = np.asarray(jnp.asarray(xb, jnp.float32))
    xb_ref = np.stack([xb32[cluster_np == c].max(axis=0) for c in range(C)])
    np.testing.assert_array_equal(
        np.asarray(jnp.asarray(out16["x"], jnp.float32)), xb_ref)

    print("KERNEL_OK")
</pallas_src>

<mosaic_0001>
module attributes {stable_mosaic.version = 11 : i64} {
  func.func @_segment_max_kernel(%arg0: i32, %arg1: memref<16xi32, #tpu.memory_space<smem>>, %arg2: memref<16xi32, #tpu.memory_space<smem>>, %arg3: memref<16xi32, #tpu.memory_space<smem>>, %arg4: memref<64x1xi32, #tpu.memory_space<vmem>>, %arg5: memref<64x128xf32, #tpu.memory_space<vmem>>, %arg6: memref<8x128xf32, #tpu.memory_space<vmem>>) attributes {dimension_semantics = [#tpu.dimension_semantics<arbitrary>], iteration_bounds = array<i64: 16>, scalar_prefetch = 3 : i64, scratch_operands = 0 : i64, tpu.core_type = #tpu.core_type<tc>, window_params = [{transform_indices = @transform_0, window_bounds = array<i64: 64, 1>}, {transform_indices = @transform_1, window_bounds = array<i64: 64, 128>}, {transform_indices = @transform_2, window_bounds = array<i64: 8, 128>}]} {
    %0 = arith.index_cast %arg0 : i32 to index
    %1 = memref.load %arg3[%0] : memref<16xi32, #tpu.memory_space<smem>>
    %c1_i32 = arith.constant 1 : i32
    %2 = arith.cmpi eq, %1, %c1_i32 : i32
    %3 = arith.extui %2 : i1 to i32
    %c0_i32 = arith.constant 0 : i32
    %4 = arith.cmpi ne, %3, %c0_i32 : i32
    scf.if %4 {
      %cst_24 = arith.constant 0xFF800000 : f32
      %86 = vector.broadcast %cst_24 : f32 to vector<8x128xf32>
      %c0_25 = arith.constant 0 : index
      %c0_26 = arith.constant 0 : index
      %87 = vector.load %arg6[%c0_25, %c0_26] : memref<8x128xf32, #tpu.memory_space<vmem>>, vector<8x128xf32>
      tpu.vector_store %arg6[%c0_25, %c0_26], %86 {strides = array<i32>} : memref<8x128xf32, #tpu.memory_space<vmem>>, vector<8x128xf32>,
    } else {
    }
    %c0 = arith.constant 0 : index
    %c0_0 = arith.constant 0 : index
    %5 = vector.load %arg4[%c0, %c0_0] : memref<64x1xi32, #tpu.memory_space<vmem>>, vector<64x1xi32>
    %c0_1 = arith.constant 0 : index
    %c0_2 = arith.constant 0 : index
    %6 = vector.load %arg5[%c0_1, %c0_2] : memref<64x128xf32, #tpu.memory_space<vmem>>, vector<64x128xf32>
    %7 = arith.index_cast %arg0 : i32 to index
    %8 = memref.load %arg1[%7] : memref<16xi32, #tpu.memory_space<smem>>
    %c8_i32 = arith.constant 8 : i32
    %9 = arith.muli %8, %c8_i32 : i32
    %c0_i32_3 = arith.constant 0 : i32
    %10 = arith.addi %9, %c0_i32_3 : i32
    %11 = vector.broadcast %10 : i32 to vector<64x1xi32>
    %12 = arith.cmpi eq, %5, %11 : vector<64x1xi32>
    %cst = arith.constant 0xFF800000 : f32
    %13 = vector.shape_cast %12 : vector<64x1xi1> to vector<64x1xi1>
    %14 = vector.broadcast %13 : vector<64x1xi1> to vector<64x128xi1>
    %15 = vector.broadcast %cst : f32 to vector<64x128xf32>
    %16 = arith.select %14, %6, %15 : vector<64x128xi1>, vector<64x128xf32>
    %cst_4 = arith.constant dense<0xFF800000> : vector<128xf32>
    %17 = vector.multi_reduction <maximumf>, %16, %cst_4 [0] : vector<64x128xf32> to vector<128xf32>
    %18 = vector.shape_cast %17 : vector<128xf32> to vector<1x128xf32>
    %c1_i32_5 = arith.constant 1 : i32
    %19 = arith.addi %9, %c1_i32_5 : i32
    %20 = vector.broadcast %19 : i32 to vector<64x1xi32>
    %21 = arith.cmpi eq, %5, %20 : vector<64x1xi32>
    %cst_6 = arith.constant 0xFF800000 : f32
    %22 = vector.shape_cast %21 : vector<64x1xi1> to vector<64x1xi1>
    %23 = vector.broadcast %22 : vector<64x1xi1> to vector<64x128xi1>
    %24 = vector.broadcast %cst_6 : f32 to vector<64x128xf32>
    %25 = arith.select %23, %6, %24 : vector<64x128xi1>, vector<64x128xf32>
    %cst_7 = arith.constant dense<0xFF800000> : vector<128xf32>
    %26 = vector.multi_reduction <maximumf>, %25, %cst_7 [0] : vector<64x128xf32> to vector<128xf32>
    %27 = vector.shape_cast %26 : vector<128xf32> to vector<1x128xf32>
    %c2_i32 = arith.constant 2 : i32
    %28 = arith.addi %9, %c2_i32 : i32
    %29 = vector.broadcast %28 : i32 to vector<64x1xi32>
    %30 = arith.cmpi eq, %5, %29 : vector<64x1xi32>
    %cst_8 = arith.constant 0xFF800000 : f32
    %31 = vector.shape_cast %30 : vector<64x1xi1> to vector<64x1xi1>
    %32 = vector.broadcast %31 : vector<64x1xi1> to vector<64x128xi1>
    %33 = vector.broadcast %cst_8 : f32 to vector<64x128xf32>
    %34 = arith.select %32, %6, %33 : vector<64x128xi1>, vector<64x128xf32>
    %cst_9 = arith.constant dense<0xFF800000> : vector<128xf32>
    %35 = vector.multi_reduction <maximumf>, %34, %cst_9 [0] : vector<64x128xf32> to vector<128xf32>
    %36 = vector.shape_cast %35 : vector<128xf32> to vector<1x128xf32>
    %c3_i32 = arith.constant 3 : i32
    %37 = arith.addi %9, %c3_i32 : i32
    %38 = vector.broadcast %37 : i32 to vector<64x1xi32>
    %39 = arith.cmpi eq, %5, %38 : vector<64x1xi32>
    %cst_10 = arith.constant 0xFF800000 : f32
    %40 = vector.shape_cast %39 : vector<64x1xi1> to vector<64x1xi1>
    %41 = vector.broadcast %40 : vector<64x1xi1> to vector<64x128xi1>
    %42 = vector.broadcast %cst_10 : f32 to vector<64x128xf32>
    %43 = arith.select %41, %6, %42 : vector<64x128xi1>, vector<64x128xf32>
    %cst_11 = arith.constant dense<0xFF800000> : vector<128xf32>
    %44 = vector.multi_reduction <maximumf>, %43, %cst_11 [0] : vector<64x128xf32> to vector<128xf32>
    %45 = vector.shape_cast %44 : vector<128xf32> to vector<1x128xf32>
    %c4_i32 = arith.constant 4 : i32
    %46 = arith.addi %9, %c4_i32 : i32
    %47 = vector.broadcast %46 : i32 to vector<64x1xi32>
    %48 = arith.cmpi eq, %5, %47 : vector<64x1xi32>
    %cst_12 = arith.constant 0xFF800000 : f32
    %49 = vector.shape_cast %48 : vector<64x1xi1> to vector<64x1xi1>
    %50 = vector.broadcast %49 : vector<64x1xi1> to vector<64x128xi1>
    %51 = vector.broadcast %cst_12 : f32 to vector<64x128xf32>
    %52 = arith.select %50, %6, %51 : vector<64x128xi1>, vector<64x128xf32>
    %cst_13 = arith.constant dense<0xFF800000> : vector<128xf32>
    %53 = vector.multi_reduction <maximumf>, %52, %cst_13 [0] : vector<64x128xf32> to vector<128xf32>
    %54 = vector.shape_cast %53 : vector<128xf32> to vector<1x128xf32>
    %c5_i32 = arith.constant 5 : i32
    %55 = arith.addi %9, %c5_i32 : i32
    %56 = vector.broadcast %55 : i32 to vector<64x1xi32>
    %57 = arith.cmpi eq, %5, %56 : vector<64x1xi32>
    %cst_14 = arith.constant 0xFF800000 : f32
    %58 = vector.shape_cast %57 : vector<64x1xi1> to vector<64x1xi1>
    %59 = vector.broadcast %58 : vector<64x1xi1> to vector<64x128xi1>
    %60 = vector.broadcast %cst_14 : f32 to vector<64x128xf32>
    %61 = arith.select %59, %6, %60 : vector<64x128xi1>, vector<64x128xf32>
    %cst_15 = arith.constant dense<0xFF800000> : vector<128xf32>
    %62 = vector.multi_reduction <maximumf>, %61, %cst_15 [0] : vector<64x128xf32> to vector<128xf32>
    %63 = vector.shape_cast %62 : vector<128xf32> to vector<1x128xf32>
    %c6_i32 = arith.constant 6 : i32
    %64 = arith.addi %9, %c6_i32 : i32
    %65 = vector.broadcast %64 : i32 to vector<64x1xi32>
    %66 = arith.cmpi eq, %5, %65 : vector<64x1xi32>
    %cst_16 = arith.constant 0xFF800000 : f32
    %67 = vector.shape_cast %66 : vector<64x1xi1> to vector<64x1xi1>
    %68 = vector.broadcast %67 : vector<64x1xi1> to vector<64x128xi1>
    %69 = vector.broadcast %cst_16 : f32 to vector<64x128xf32>
    %70 = arith.select %68, %6, %69 : vector<64x128xi1>, vector<64x128xf32>
    %cst_17 = arith.constant dense<0xFF800000> : vector<128xf32>
    %71 = vector.multi_reduction <maximumf>, %70, %cst_17 [0] : vector<64x128xf32> to vector<128xf32>
    %72 = vector.shape_cast %71 : vector<128xf32> to vector<1x128xf32>
    %c7_i32 = arith.constant 7 : i32
    %73 = arith.addi %9, %c7_i32 : i32
    %74 = vector.broadcast %73 : i32 to vector<64x1xi32>
    %75 = arith.cmpi eq, %5, %74 : vector<64x1xi32>
    %cst_18 = arith.constant 0xFF800000 : f32
    %76 = vector.shape_cast %75 : vector<64x1xi1> to vector<64x1xi1>
    %77 = vector.broadcast %76 : vector<64x1xi1> to vector<64x128xi1>
    %78 = vector.broadcast %cst_18 : f32 to vector<64x128xf32>
    %79 = arith.select %77, %6, %78 : vector<64x128xi1>, vector<64x128xf32>
    %cst_19 = arith.constant dense<0xFF800000> : vector<128xf32>
    %80 = vector.multi_reduction <maximumf>, %79, %cst_19 [0] : vector<64x128xf32> to vector<128xf32>
    %81 = vector.shape_cast %80 : vector<128xf32> to vector<1x128xf32>
    %82 = tpu.concatenate %18, %27, %36, %45, %54, %63, %72, %81 in 0 : vector<1x128xf32>, vector<1x128xf32>, vector<1x128xf32>, vector<1x128xf32>, vector<1x128xf32>, vector<1x128xf32>, vector<1x128xf32>, vector<1x128xf32> -> vector<8x128xf32>
    %c0_20 = arith.constant 0 : index
    %c0_21 = arith.constant 0 : index
    %83 = vector.load %arg6[%c0_20, %c0_21] : memref<8x128xf32, #tpu.memory_space<vmem>>, vector<8x128xf32>
    %84 = arith.maximumf %83, %82 : vector<8x128xf32>
    %c0_22 = arith.constant 0 : index
    %c0_23 = arith.constant 0 : index
    %85 = vector.load %arg6[%c0_22, %c0_23] : memref<8x128xf32, #tpu.memory_space<vmem>>, vector<8x128xf32>
    tpu.vector_store %arg6[%c0_22, %c0_23], %84 {strides = array<i32>} : memref<8x128xf32, #tpu.memory_space<vmem>>, vector<8x128xf32>,
    return
  }
  func.func @transform_0(%arg0: i32, %arg1: memref<16xi32, #tpu.memory_space<smem>>, %arg2: memref<16xi32, #tpu.memory_space<smem>>, %arg3: memref<16xi32, #tpu.memory_space<smem>>) -> (i32, i32) {
    %0 = arith.index_cast %arg0 : i32 to index
    %1 = memref.load %arg2[%0] : memref<16xi32, #tpu.memory_space<smem>>
    %c0_i32 = arith.constant 0 : i32
    %c0_i32_0 = arith.constant 0 : i32
    return %1, %c0_i32 : i32, i32
  }
  func.func @transform_1(%arg0: i32, %arg1: memref<16xi32, #tpu.memory_space<smem>>, %arg2: memref<16xi32, #tpu.memory_space<smem>>, %arg3: memref<16xi32, #tpu.memory_space<smem>>) -> (i32, i32) {
    %0 = arith.index_cast %arg0 : i32 to index
    %1 = memref.load %arg2[%0] : memref<16xi32, #tpu.memory_space<smem>>
    %c0_i32 = arith.constant 0 : i32
    %c0_i32_0 = arith.constant 0 : i32
    return %1, %c0_i32 : i32, i32
  }
  func.func @transform_2(%arg0: i32, %arg1: memref<16xi32, #tpu.memory_space<smem>>, %arg2: memref<16xi32, #tpu.memory_space<smem>>, %arg3: memref<16xi32, #tpu.memory_space<smem>>) -> (i32, i32) {
    %0 = arith.index_cast %arg0 : i32 to index
    %1 = memref.load %arg1[%0] : memref<16xi32, #tpu.memory_space<smem>>
    %c0_i32 = arith.constant 0 : i32
    %c0_i32_0 = arith.constant 0 : i32
    return %1, %c0_i32 : i32, i32
  }
}

</mosaic_0001>

<bundles_post_ra>
// kernel: tpu_custom_call.1
= control target key start
LH: loop header
LB: loop body
LE: loop exit
PB: predicated region body
PF: predicated region fallthrough
CT: control target
= control target key end

     0   :  { %s1615_s0 = inlined_call_operand.vmem [shape: s32[16], index: 0, kind: input, shape index: {}]   ;;  %s1616_s3 = inlined_call_operand.vmem [shape: s32[256,1], index: 3, kind: input, shape index: {}]   ;;  %s1617_s4 = inlined_call_operand.vmem [shape: f32[256,128], index: 4, kind: input, shape index: {}]   ;;  %s1618_s5 = inlined_call_operand.hbm [shape: f32[104,128], index: 5, kind: output, shape index: {}]   ;;  %s1619_s1 = inlined_call_operand.vmem [shape: s32[16], index: 1, kind: input, shape index: {}]   ;;  %s1620_s2 = inlined_call_operand.vmem [shape: s32[16], index: 2, kind: input, shape index: {}]  }
   0x1   :  { %s10_s20 = sshll.u32 %s1615_s0, 4  ;;  %s14_s23 = sshll.u32 %s1619_s1, 4  ;;  %s11_s20 = int_to_ptr.vmem [resolvable:$true] %s10_s20  ;;  %s15_s23 = int_to_ptr.vmem [resolvable:$true] %s14_s23 }
   0x2   :  { %s957_s24 = scalar_lea.vmem %s11_s20, 16  ;;  %p962_p1 = scmp.lt.s32.totalorder %s11_s20, %s11_s20 }
   0x3   :  { %p958_p0 = scmp.ne.s32.totalorder %s11_s20, %s957_s24  ;;  %p963_p2 = scmp.lt.s32.totalorder %s957_s24, %s957_s24 }
   0x5   :  { %p964_p3 = por %p963_p2, %p962_p1 }
   0x7   :  { %p965_p4 = pnand %p964_p3, %p958_p0 }
   0x9   :  { %968 = shalt.err (!%p965_p4)  }
   0xa   :  { %s1059_s25 = smov [#allocation3]   ;;  %s969_s26 = scalar_lea.vmem %s15_s23, 16 }
   0xb   :  { %13 = dma.vmem_to_smem %s11_s20, 16, %s1059_s25, [#allocation2] }
   0xc   :  { %p970_p5 = scmp.ne.s32.totalorder %s15_s23, %s969_s26  ;;  %p974_p6 = scmp.lt.s32.totalorder %s15_s23, %s15_s23 }
   0xd   :  { %p975_p7 = scmp.lt.s32.totalorder %s969_s26, %s969_s26 }
   0xf   :  { %p976_p8 = por %p975_p7, %p974_p6 }
  0x11   :  { %p977_p9 = pnand %p976_p8, %p970_p5 }
  0x13   :  { %980 = shalt.err (!%p977_p9)  }
  0x14   :  { %s1060_s0 = smov [#allocation4]   ;;  %s18_s28 = sshll.u32 %s1620_s2, 4  ;;  %s19_s28 = int_to_ptr.vmem [resolvable:$true] %s18_s28 }
  0x15   :  { %17 = dma.vmem_to_smem %s15_s23, 16, %s1060_s0, [#allocation2] }
  0x16   :  { %s981_s29 = scalar_lea.vmem %s19_s28, 16  ;;  %p986_p11 = scmp.lt.s32.totalorder %s19_s28, %s19_s28 }
  0x17   :  { %p982_p10 = scmp.ne.s32.totalorder %s19_s28, %s981_s29  ;;  %p987_p12 = scmp.lt.s32.totalorder %s981_s29, %s981_s29 }
  0x19   :  { %p988_p13 = por %p987_p12, %p986_p11 }
  0x1b   :  { %p989_p0 = pnand %p988_p13, %p982_p10 }
  0x1d   :  { %992 = shalt.err (!%p989_p0)  }
  0x1e   :  { %s1061_s30 = smov [#allocation5]  }
  0x1f   :  { %21 = dma.vmem_to_smem %s19_s28, 16, %s1061_s30, [#allocation2] }
  0x20   :  { %1037 = dma.done.wait [#allocation2], 48 }
  0x21   :  { %1038 = vsyncadd [#allocation2], 4294967248 }
  0x22   :  { %23 = sfence }
  0x23   :  { %24 = vsyncpa [#allocation7], 0 }
  0x24   :  { %26 = vsyncpa [#allocation7 + $0x1], 0  ;;  %s1104_s6 = smov 0   ;;  %s1106_s7 = smov 0  }
  0x25   :  { %s1108_s2 = smov 0   ;;  %s1110_s8 = smov 0  }
  0x26 LB: > { %s1125_s9 = sadd.s32 4294967295, %s1057_s8   ;;  %s894_s10 = sadd.s32 4294967294, %s1057_s8   ;;  %s1057_s8 = sphi %s1110_s8, %s1626_s8   ;;  %s1053_s2 = sphi %s1108_s2, %s1625_s2   ;;  %s1049_s7 = sphi %s1106_s7, %s1624_s7   ;;  %s1045_s6 = sphi %s1104_s6, %s1623_s6  }
  0x27   : > { %s1129_s11 = sadd.s32 1, %s1057_s8   ;;  %s92_s12 = sld [smem:[#allocation3 + %s1057_s8]] }
  0x28   : > { %s93_s13 = sld [smem:[#allocation3 + %s1129_s11]]  ;;  %p107_p1 = scmp.ne.s32.totalorder %s1053_s2, %s1049_s7 }
  0x29   : > { %p108_p2 = scmp.eq.s32.totalorder %s1125_s9, 15  ;;  %p113_p3 = scmp.ne.s32.totalorder %s1049_s7, %s1045_s6 }
  0x2a   : > { %p114_p4 = scmp.eq.s32.totalorder %s894_s10, 15  ;;  %p897_p6 = scmp.ge.s32.totalorder %s1057_s8, 1 }
  0x2b   : > { %p1138_p5 = por %p108_p2, %p107_p1  ;;  %p154_p8 = scmp.lt.s32.totalorder %s1057_s8, 17 }
  0x2c   : > { %p1143_p7 = por %p114_p4, %p113_p3  ;;  %s97_s16 = sadd.s32 1, %s1053_s2 }
  0x2d   : > { %p155_p9 = pnand %p897_p6, %p154_p8 }
  0x2e   : > { %s94_s17 = ssub.s32 %s92_s12, %s93_s13  ;;  %s180_s19 = sand.u32 (!%p155_p9), 1, %s1049_s7  }
  0x2f   : > { %p95_p10 = scmp.eq.s32.totalorder %s94_s17, 0  ;;  %158 = sbr.rel (%p155_p9) target bundleno = 366 (0x16e), region = 28 }
  0x30   : > { %s183_s20 = sld [smem:[#allocation4 + %s1125_s9]] (!%p155_p9)  ;;  %s898_s21 = sshll.u32 (!%p155_p9), %s180_s19, 3 }
  0x31   : > { %s1150_s18 = scalar_select %p95_p10, %s1053_s2, %s97_s16  }
  0x32   : > { %s191_s22 = sld [smem:[#allocation4 + %s1125_s9]] (!%p155_p9)  ;;  %s1168_s12 = scalar_lea.vmem (!%p155_p9), [#allocation6], %s898_s21 }
  0x33   : > { %s200_s23 = sld [smem:[#allocation5 + %s1125_s9]] (!%p155_p9) }
  0x36   : > { %s899_s24 = sshll.u32 %s183_s20, 3 }
  0x37   : > { %p185_p11 = scmp.lt.s32.totalorder %s899_s24, 31 }
  0x38   : > { %s901_s25 = sshll.u32 %s191_s22, 3 }
  0x39   : > { %p193_p12 = scmp.lt.s32.totalorder %s901_s25, 31  ;;  %s1628_s24 = smov (!%p185_p11, %s899_s24), 31 }
  0x3a   : > { %s900_s26 = sshll.u32 %s1628_s24, 3  ;;  %p903_p13 = scmp.ne.s32.totalorder %s200_s23, 1 }
  0x3b   : > { %s1630_s25 = smov (!%p193_p12, %s901_s25), 31  ;;  %s1161_s27 = scalar_lea.vmem %s1616_s3, %s900_s26  ;;  %v1062_v0 = vmov (!%p903_p13), -inf  }
  0x3c   : > { %s902_s28 = sshll.u32 %s1630_s25, 3  ;;  %204 = sbr.rel (%p903_p13) target bundleno = 67 (0x43), region = 32  ;;  %205 = vst [vmem:[%s1168_s12] sm:$0xff] (!%p903_p13), %v1062_v0 }
  0x3d   : > { %s1166_s10 = scalar_lea.vmem %s1617_s4, %s902_s28 }
  0x43 PF: > { %s222_s13 = sld [smem:[#allocation3 + %s1125_s9]]  ;;  %v1063_v1 = vmov 0   ;;  %v1175_v2 = vld [vmem:[%s1161_s27 + $0x10] sm:$0xff]  ;;  %v1178_v3 = vld [vmem:[%s1161_s27] sm:$0xff]  ;;  %v1181_v4 = vld [vmem:[%s1161_s27 + $0x18] sm:$0xff]  ;;  %s1632_s9 = smov (!%p1138_p5, %s1125_s9), 0 }
  0x44   : > { %956 = vset.pattern.permute.xlu1 %v1063_v1  ;;  %955 = vset.pattern.permute.xlu0 %v1063_v1  ;;  %v1184_v5 = vld [vmem:[%s1161_s27 + $0x8] sm:$0xff]  ;;  %v1199_v10 = vld [vmem:[%s1161_s27 + $0x20] sm:$0xff]  ;;  %v1206_v13 = vld [vmem:[%s1161_s27 + $0x38] sm:$0xff]  ;;  %s909_s26 = scalar_select %p1138_p5, [#allocation3], [#allocation8] }
  0x45   : > { %v1196_v9 = vld [vmem:[%s1161_s27 + $0x28] sm:$0xff]  ;;  %v1209_v14 = vld [vmem:[%s1161_s27 + $0x30] sm:$0xff]  ;;  %s823_s1 = sshll.u32 %s1168_s12, 4  ;;  %s809_s30 = scalar_lea.sflag [#allocation7], %s180_s19  ;;  %s1572_s1 = int_to_ptr.vmem [resolvable:$true] %s823_s1 }
  0x46   : > { %s816_s0 = sld [smem:[%s909_s26 + %s1632_s9]] }
  0x49   : > { %s1186_s16 = sshll.u32 %s222_s13, 3  ;;  %s1064_s13 = smov [#allocation6]  }
  0x4a   : > { %v224_v6 = vstv %s1186_s16  ;;  %s294_s17 = sadd.s32 1, %s1186_s16  ;;  %s365_s20 = sadd.s32 2, %s1186_s16 }
  0x4b   : > { %vm227_vm0 = vcmp.eq.s32.totalorder %v1175_v2, %v224_v6  ;;  %vm225_vm1 = vcmp.eq.s32.totalorder %v1178_v3, %v224_v6  ;;  %vm228_vm2 = vcmp.eq.s32.totalorder %v1181_v4, %v224_v6  ;;  %vm226_vm3 = vcmp.eq.s32.totalorder %v1184_v5, %v224_v6  ;;  %s507_s21 = sadd.s32 4, %s1186_s16  ;;  %s578_s22 = sadd.s32 5, %s1186_s16 }
  0x4c   : > { %v235_v7 = vsel %vm227_vm0, 1, %v1063_v1  ;;  %v233_v8 = vsel %vm225_vm1, 1, %v1063_v1  ;;  %v236_v11 = vsel %vm228_vm2, 1, %v1063_v1  ;;  %v234_v12 = vsel %vm226_vm3, 1, %v1063_v1  ;;  %s649_s23 = sadd.s32 6, %s1186_s16  ;;  %s720_s24 = sadd.s32 7, %s1186_s16 }
  0x4d   : > { %248 = vperm.xlu1 %956, %v235_v7   ;;  %242 = vperm.xlu0 %955, %v233_v8   ;;  %vm230_vm4 = vcmp.eq.s32.totalorder %v1196_v9, %v224_v6  ;;  %vm229_vm5 = vcmp.eq.s32.totalorder %v1199_v10, %v224_v6  ;;  %vm232_vm6 = vcmp.eq.s32.totalorder %v1206_v13, %v224_v6  ;;  %v295_v17 = vstv %s294_s17  ;;  %s436_s25 = sadd.s32 3, %s1186_s16  ;;  %s906_s9 = sshll.u32 %s816_s0, 7 }
  0x4e   : > { %v238_v15 = vsel %vm230_vm4, 1, %v1063_v1  ;;  %v237_v16 = vsel %vm229_vm5, 1, %v1063_v1  ;;  %vm231_vm7 = vcmp.eq.s32.totalorder %v1209_v14, %v224_v6  ;;  %v240_v18 = vsel %vm232_vm6, 1, %v1063_v1  ;;  %s1570_s29 = scalar_lea.hbm %s1618_s5, %s906_s9  ;;  %s997_s16 = sshll.u32 %s1064_s13, 4  ;;  %s998_s16 = int_to_ptr.vmem [resolvable:$false] %s997_s16 }
  0x4f   : > { %v239_v19 = vsel %vm231_vm7, 1, %v1063_v1  ;;  %vm297_vm8 = vcmp.eq.s32.totalorder %v1184_v5, %v295_v17  ;;  %vm296_vm9 = vcmp.eq.s32.totalorder %v1178_v3, %v295_v17  ;;  %vm299_vm10 = vcmp.eq.s32.totalorder %v1181_v4, %v295_v17  ;;  %s999_s17 = scalar_lea.vmem %s998_s16, 256  ;;  %p1000_p3 = scmp.lt.s32.totalorder %s1572_s1, %s998_s16 }
  0x50   : > { %vm298_vm11 = vcmp.eq.s32.totalorder %v1175_v2, %v295_v17  ;;  %vm301_vm12 = vcmp.eq.s32.totalorder %v1196_v9, %v295_v17  ;;  %vm300_vm13 = vcmp.eq.s32.totalorder %v1199_v10, %v295_v17  ;;  %vm303_vm14 = vcmp.eq.s32.totalorder %v1206_v13, %v295_v17 }
  0x51   : > { %251 = vperm.xlu1 %956, %v236_v11   ;;  %245 = vperm.xlu0 %955, %v234_v12   ;;  %vm302_vm15 = vcmp.eq.s32.totalorder %v1209_v14, %v295_v17  ;;  %v1228_v20 = vstv %s365_s20  ;;  %v1230_v21 = vstv %s507_s21  ;;  %v305_v22 = vsel %vm297_vm8, 1, %v1063_v1 }
  0x52   : > { %v304_v23 = vsel %vm296_vm9, 1, %v1063_v1  ;;  %v307_v24 = vsel %vm299_vm10, 1, %v1063_v1  ;;  %v306_v25 = vsel %vm298_vm11, 1, %v1063_v1  ;;  %v309_v26 = vsel %vm301_vm12, 1, %v1063_v1 }
  0x53   : > { %v308_v27 = vsel %vm300_vm13, 1, %v1063_v1  ;;  %v1239_v28 = vsel %vm303_vm14, 1, %v1063_v1  ;;  %v1242_v29 = vsel %vm302_vm15, 1, %v1063_v1  ;;  %vm368_vm0 = vcmp.eq.s32.totalorder %v1184_v5, %v1228_v20 }
  0x54   : > { %vm509_vm1 = vcmp.eq.s32.totalorder %v1178_v3, %v1230_v21  ;;  %vm512_vm2 = vcmp.eq.s32.totalorder %v1181_v4, %v1230_v21  ;;  %vm511_vm3 = vcmp.eq.s32.totalorder %v1175_v2, %v1230_v21  ;;  %vm367_vm4 = vcmp.eq.s32.totalorder %v1178_v3, %v1228_v20 }
  0x55   : > { %257 = vperm.xlu1 %956, %v238_v15   ;;  %254 = vperm.xlu0 %955, %v237_v16   ;;  %v1255_v30 = vsel %vm509_vm1, 1, %v1063_v1  ;;  %v1258_v31 = vsel %vm512_vm2, 1, %v1063_v1  ;;  %v1261_v32 = vsel %vm511_vm3, 1, %v1063_v1  ;;  %vm514_vm5 = vcmp.eq.s32.totalorder %v1196_v9, %v1230_v21 }
  0x56   : > { %vm513_vm6 = vcmp.eq.s32.totalorder %v1199_v10, %v1230_v21  ;;  %vm516_vm7 = vcmp.eq.s32.totalorder %v1206_v13, %v1230_v21  ;;  %vm515_vm8 = vcmp.eq.s32.totalorder %v1209_v14, %v1230_v21  ;;  %v1275_v33 = vsel %vm514_vm5, 1, %v1063_v1 }
  0x57   : > { %v1278_v34 = vsel %vm513_vm6, 1, %v1063_v1  ;;  %v1281_v35 = vsel %vm516_vm7, 1, %v1063_v1  ;;  %v1284_v36 = vsel %vm515_vm8, 1, %v1063_v1  ;;  %v376_v37 = vsel %vm368_vm0, 1, %v1063_v1 }
  0x58   : > { %v375_v38 = vsel %vm367_vm4, 1, %v1063_v1  ;;  %v579_v39 = vstv %s578_s22  ;;  %v650_v40 = vstv %s649_s23  ;;  %v721_v41 = vstv %s720_s24 }
  0x59   : > { %263 = vperm.xlu1 %956, %v240_v18   ;;  %260 = vperm.xlu0 %955, %v239_v19   ;;  %vm581_vm9 = vcmp.eq.s32.totalorder %v1184_v5, %v579_v39  ;;  %vm580_vm10 = vcmp.eq.s32.totalorder %v1178_v3, %v579_v39  ;;  %vm583_vm11 = vcmp.eq.s32.totalorder %v1181_v4, %v579_v39  ;;  %v437_v15 = vstv %s436_s25 }
  0x5a   : > { %v1298_v42 = vsel %vm581_vm9, 1, %v1063_v1  ;;  %v1301_v43 = vsel %vm580_vm10, 1, %v1063_v1  ;;  %v1304_v44 = vsel %vm583_vm11, 1, %v1063_v1  ;;  %vm582_vm12 = vcmp.eq.s32.totalorder %v1175_v2, %v579_v39 }
  0x5b   : > { %vm370_vm13 = vcmp.eq.s32.totalorder %v1181_v4, %v1228_v20  ;;  %vm369_vm14 = vcmp.eq.s32.totalorder %v1175_v2, %v1228_v20  ;;  %v1312_v45 = vsel %vm582_vm12, 1, %v1063_v1  ;;  %vm585_vm15 = vcmp.eq.s32.totalorder %v1196_v9, %v579_v39 }
  0x5c   : > { %vm584_vm0 = vcmp.eq.s32.totalorder %v1199_v10, %v579_v39  ;;  %vm587_vm1 = vcmp.eq.s32.totalorder %v1206_v13, %v579_v39  ;;  %v1318_v46 = vsel %vm585_vm15, 1, %v1063_v1  ;;  %vm586_vm2 = vcmp.eq.s32.totalorder %v1209_v14, %v579_v39 }
  0x5d   : > { %316 = vperm.xlu1 %956, %v305_v22   ;;  %313 = vperm.xlu0 %955, %v304_v23   ;;  %v1321_v47 = vsel %vm584_vm0, 1, %v1063_v1  ;;  %v1324_v48 = vsel %vm587_vm1, 1, %v1063_v1  ;;  %v1328_v49 = vsel %vm586_vm2, 1, %v1063_v1  ;;  %vm652_vm3 = vcmp.eq.s32.totalorder %v1184_v5, %v650_v40 }
  0x5e   : > { %vm651_vm4 = vcmp.eq.s32.totalorder %v1178_v3, %v650_v40  ;;  %vm654_vm5 = vcmp.eq.s32.totalorder %v1181_v4, %v650_v40  ;;  %v1334_v50 = vsel %vm652_vm3, 1, %v1063_v1  ;;  %vm653_vm6 = vcmp.eq.s32.totalorder %v1175_v2, %v650_v40 }
  0x5f   : > { %v1337_v51 = vsel %vm651_vm4, 1, %v1063_v1  ;;  %v1340_v52 = vsel %vm654_vm5, 1, %v1063_v1  ;;  %v1344_v53 = vsel %vm653_vm6, 1, %v1063_v1  ;;  %vm656_vm7 = vcmp.eq.s32.totalorder %v1196_v9, %v650_v40 }
  0x60   : > { %vm655_vm8 = vcmp.eq.s32.totalorder %v1199_v10, %v650_v40  ;;  %vm658_vm9 = vcmp.eq.s32.totalorder %v1206_v13, %v650_v40  ;;  %v1350_v54 = vsel %vm656_vm7, 1, %v1063_v1  ;;  %vm657_vm10 = vcmp.eq.s32.totalorder %v1209_v14, %v650_v40 }
  0x61   : > { %322 = vperm.xlu1 %956, %v307_v24   ;;  %319 = vperm.xlu0 %955, %v306_v25   ;;  %v1353_v55 = vsel %vm655_vm8, 1, %v1063_v1  ;;  %v1356_v56 = vsel %vm658_vm9, 1, %v1063_v1  ;;  %v1362_v57 = vsel %vm657_vm10, 1, %v1063_v1  ;;  %vm723_vm11 = vcmp.eq.s32.totalorder %v1184_v5, %v721_v41  ;;  %v1474_v24 = vld [vmem:[%s1166_s10 + $0x28] sm:$0xff]  ;;  %v1477_v25 = vld [vmem:[%s1166_s10 + $0x20] sm:$0xff] }
  0x62   : > { %vm722_vm12 = vcmp.eq.s32.totalorder %v1178_v3, %v721_v41  ;;  %vm725_vm15 = vcmp.eq.s32.totalorder %v1181_v4, %v721_v41  ;;  %v1368_v58 = vsel %vm723_vm11, 1, %v1063_v1  ;;  %vm724_vm0 = vcmp.eq.s32.totalorder %v1175_v2, %v721_v41 }
  0x63   : > { %v1371_v59 = vsel %vm722_vm12, 1, %v1063_v1  ;;  %v1374_v60 = vsel %vm725_vm15, 1, %v1063_v1  ;;  %v1378_v61 = vsel %vm724_vm0, 1, %v1063_v1  ;;  %vm727_vm1 = vcmp.eq.s32.totalorder %v1196_v9, %v721_v41 }
  0x64   : > { %vm726_vm2 = vcmp.eq.s32.totalorder %v1199_v10, %v721_v41  ;;  %vm729_vm3 = vcmp.eq.s32.totalorder %v1206_v13, %v721_v41  ;;  %v1384_v62 = vsel %vm727_vm1, 1, %v1063_v1  ;;  %vm728_vm4 = vcmp.eq.s32.totalorder %v1209_v14, %v721_v41 }
  0x65   : > { %328 = vperm.xlu1 %956, %v309_v26   ;;  %325 = vperm.xlu0 %955, %v308_v27   ;;  %v1387_v63 = vsel %vm726_vm2, 1, %v1063_v1  ;;  %v1390_v0 = vsel %vm729_vm3, 1, %v1063_v1  ;;  %v1394_v6 = vsel %vm728_vm4, 1, %v1063_v1  ;;  %v378_v7 = vsel %vm370_vm13, 1, %v1063_v1 }
  0x66   : > { %v377_v8 = vsel %vm369_vm14, 1, %v1063_v1  ;;  %vm372_vm5 = vcmp.eq.s32.totalorder %v1196_v9, %v1228_v20  ;;  %vm371_vm6 = vcmp.eq.s32.totalorder %v1199_v10, %v1228_v20  ;;  %vm374_vm13 = vcmp.eq.s32.totalorder %v1206_v13, %v1228_v20 }
  0x67   : > { %v380_v11 = vsel %vm372_vm5, 1, %v1063_v1  ;;  %v379_v12 = vsel %vm371_vm6, 1, %v1063_v1  ;;  %vm373_vm7 = vcmp.eq.s32.totalorder %v1209_v14, %v1228_v20  ;;  %v382_v16 = vsel %vm374_vm13, 1, %v1063_v1 }
  0x68   : > { %v381_v17 = vsel %vm373_vm7, 1, %v1063_v1  ;;  %vm439_vm14 = vcmp.eq.s32.totalorder %v1184_v5, %v437_v15  ;;  %vm438_vm8 = vcmp.eq.s32.totalorder %v1178_v3, %v437_v15  ;;  %vm441_vm9 = vcmp.eq.s32.totalorder %v1181_v4, %v437_v15 }
  0x69   : > { %334 = vperm.xlu1 %956, %v1239_v28   ;;  %331 = vperm.xlu0 %955, %v1242_v29   ;;  %v447_v18 = vsel %vm439_vm14, 1, %v1063_v1  ;;  %v446_v19 = vsel %vm438_vm8, 1, %v1063_v1  ;;  %vm440_vm10 = vcmp.eq.s32.totalorder %v1175_v2, %v437_v15  ;;  %v449_v20 = vsel %vm441_vm9, 1, %v1063_v1  ;;  %v1480_v28 = vld [vmem:[%s1166_s10 + $0x10] sm:$0xff] }
  0x6a   : > { %v448_v22 = vsel %vm440_vm10, 1, %v1063_v1  ;;  %vm443_vm11 = vcmp.eq.s32.totalorder %v1196_v9, %v437_v15  ;;  %vm442_vm12 = vcmp.eq.s32.totalorder %v1199_v10, %v437_v15  ;;  %vm445_vm15 = vcmp.eq.s32.totalorder %v1206_v13, %v437_v15 }
  0x6b   : > { %v451_v3 = vsel %vm443_vm11, 1, %v1063_v1  ;;  %v450_v23 = vsel %vm442_vm12, 1, %v1063_v1  ;;  %vm444_vm0 = vcmp.eq.s32.totalorder %v1209_v14, %v437_v15  ;;  %v453_v2 = vsel %vm445_vm15, 1, %v1063_v1  ;;  %v1468_v14 = vld [vmem:[%s1166_s10] sm:$0xff] }
  0x6c   : > { %v452_v4 = vsel %vm444_vm0, 1, %v1063_v1  ;;  %vm510_vm1 = vcmp.eq.s32.totalorder %v1184_v5, %v1230_v21  ;;  %v1471_v21 = vld [vmem:[%s1166_s10 + $0x8] sm:$0xff] }
  0x6d   : > { %387 = vperm.xlu1 %956, %v376_v37   ;;  %384 = vperm.xlu0 %955, %v375_v38   ;;  %v518_v9 = vsel %vm510_vm1, 1, %v1063_v1  ;;  %v1493_v37 = vld [vmem:[%s1166_s10 + $0x30] sm:$0xff] }
  0x71   : > { %393 = vperm.xlu1 %956, %v378_v7   ;;  %390 = vperm.xlu0 %955, %v377_v8  }
  0x75   : > { %399 = vperm.xlu1 %956, %v380_v11   ;;  %396 = vperm.xlu0 %955, %v379_v12  }
  0x79   : > { %405 = vperm.xlu1 %956, %v382_v16   ;;  %402 = vperm.xlu0 %955, %v381_v17  }
  0x7d   : > { %458 = vperm.xlu1 %956, %v447_v18   ;;  %455 = vperm.xlu0 %955, %v446_v19  }
  0x81   : > { %464 = vperm.xlu1 %956, %v449_v20   ;;  %461 = vperm.xlu0 %955, %v448_v22  }
  0x85   : > { %470 = vperm.xlu1 %956, %v451_v3   ;;  %467 = vperm.xlu0 %955, %v450_v23  }
  0x89   : > { %476 = vperm.xlu1 %956, %v453_v2   ;;  %473 = vperm.xlu0 %955, %v452_v4  }
  0x8d   : > { %529 = vperm.xlu1 %956, %v518_v9   ;;  %526 = vperm.xlu0 %955, %v1255_v30  }
  0x91   : > { %535 = vperm.xlu1 %956, %v1258_v31   ;;  %532 = vperm.xlu0 %955, %v1261_v32  }
  0x95   : > { %541 = vperm.xlu1 %956, %v1275_v33   ;;  %538 = vperm.xlu0 %955, %v1278_v34   ;;  %v1487_v33 = vld [vmem:[%s1166_s10 + $0x18] sm:$0xff] }
  0x99   : > { %547 = vperm.xlu1 %956, %v1281_v35   ;;  %544 = vperm.xlu0 %955, %v1284_v36   ;;  %v1490_v36 = vld [vmem:[%s1166_s10 + $0x38] sm:$0xff]  ;;  %s993_s10 = scalar_lea.vmem %s1572_s1, 128 }
  0x9a   : > { %p994_p0 = scmp.ne.s32.totalorder %s1572_s1, %s993_s10  ;;  %p1001_p4 = scmp.lt.s32.totalorder %s999_s17, %s993_s10 }
  0x9c   : > { %p995_p1 = pnand %p994_p0, %p1138_p5  ;;  %p1002_p6 = por %p1001_p4, %p1000_p3 }
  0x9d   : > { %600 = vperm.xlu1 %956, %v1298_v42   ;;  %597 = vperm.xlu0 %955, %v1301_v43  }
  0x9e   : > { %p996_p2 = pneg %p995_p1 }
  0xa0   : > { %p1003_p8 = pnand %p1002_p6, %p996_p2 }
  0xa1   : > { %606 = vperm.xlu1 %956, %v1304_v44   ;;  %603 = vperm.xlu0 %955, %v1312_v45  }
  0xa5   : > { %612 = vperm.xlu1 %956, %v1318_v46   ;;  %609 = vperm.xlu0 %955, %v1321_v47  }
  0xa9   : > { %618 = vperm.xlu1 %956, %v1324_v48   ;;  %615 = vperm.xlu0 %955, %v1328_v49  }
  0xad   : > { %671 = vperm.xlu1 %956, %v1334_v50   ;;  %668 = vperm.xlu0 %955, %v1337_v51  }
  0xb1   : > { %677 = vperm.xlu1 %956, %v1340_v52   ;;  %674 = vperm.xlu0 %955, %v1344_v53  }
  0xb5   : > { %683 = vperm.xlu1 %956, %v1350_v54   ;;  %680 = vperm.xlu0 %955, %v1353_v55  }
  0xb9   : > { %689 = vperm.xlu1 %956, %v1356_v56   ;;  %686 = vperm.xlu0 %955, %v1362_v57  }
  0xbd   : > { %742 = vperm.xlu1 %956, %v1368_v58   ;;  %739 = vperm.xlu0 %955, %v1371_v59  }
  0xc1   : > { %748 = vperm.xlu1 %956, %v1374_v60   ;;  %745 = vperm.xlu0 %955, %v1378_v61  }
  0xc5   : > { %754 = vperm.xlu1 %956, %v1384_v62   ;;  %751 = vperm.xlu0 %955, %v1387_v63  }
  0xc9   : > { %760 = vperm.xlu1 %956, %v1390_v0   ;;  %757 = vperm.xlu0 %955, %v1394_v6  }
  0xcc   : > { %v249_v1 = vpop.permute.xlu1 %248  ;;  %v243_v5 = vpop.permute.xlu0 %242 }
  0xcd   : > { %vm265_vm2 = vcmp.eq.s32.totalorder %v243_v5, 1  ;;  %vm267_vm6 = vcmp.eq.s32.totalorder %v249_v1, 1 }
  0xce   : > { %v273_v29 = vsel %vm265_vm2, %v1468_v14, -inf  ;;  %v275_v41 = vsel %vm267_vm6, %v1480_v28, -inf }
  0xd0   : > { %v252_v10 = vpop.permute.xlu1 %251  ;;  %v246_v13 = vpop.permute.xlu0 %245 }
  0xd1   : > { %vm266_vm3 = vcmp.eq.s32.totalorder %v246_v13, 1  ;;  %vm268_vm13 = vcmp.eq.s32.totalorder %v252_v10, 1 }
  0xd2   : > { %v274_v30 = vsel %vm266_vm3, %v1471_v21, -inf  ;;  %v276_v42 = vsel %vm268_vm13, %v1487_v33, -inf }
  0xd4   : > { %v258_v26 = vpop.permute.xlu1 %257  ;;  %v255_v27 = vpop.permute.xlu0 %254 }
  0xd5   : > { %vm270_vm4 = vcmp.eq.s32.totalorder %v258_v26, 1  ;;  %vm269_vm5 = vcmp.eq.s32.totalorder %v255_v27, 1 }
  0xd6   : > { %v278_v31 = vsel %vm270_vm4, %v1474_v24, -inf  ;;  %v277_v32 = vsel %vm269_vm5, %v1477_v25, -inf }
  0xd7   : > { %v282_v34 = vmax.f32 %v274_v30, %v278_v31  ;;  %v281_v35 = vmax.f32 %v273_v29, %v277_v32 }
  0xd8   : > { %v264_v38 = vpop.permute.xlu1 %263  ;;  %v261_v39 = vpop.permute.xlu0 %260 }
  0xd9   : > { %v285_v40 = vmax.f32 %v281_v35, %v282_v34  ;;  %vm272_vm7 = vcmp.eq.s32.totalorder %v264_v38, 1  ;;  %vm271_vm14 = vcmp.eq.s32.totalorder %v261_v39, 1 }
  0xda   : > { %v280_v43 = vsel %vm272_vm7, %v1490_v36, -inf  ;;  %v279_v44 = vsel %vm271_vm14, %v1493_v37, -inf  ;;  %vm791_vm7 = vcmask 1040384  }
  0xdb   : > { %v284_v45 = vmax.f32 %v276_v42, %v280_v43  ;;  %v283_v46 = vmax.f32 %v275_v41, %v279_v44 }
  0xdc   : > { %v317_v47 = vpop.permute.xlu1 %316  ;;  %v314_v48 = vpop.permute.xlu0 %313 }
  0xdd   : > { %v286_v49 = vmax.f32 %v283_v46, %v284_v45  ;;  %vm337_vm8 = vcmp.eq.s32.totalorder %v317_v47, 1  ;;  %vm336_vm9 = vcmp.eq.s32.totalorder %v314_v48, 1 }
  0xde   : > { %v345_v56 = vsel %vm337_vm8, %v1471_v21, -inf  ;;  %v344_v57 = vsel %vm336_vm9, %v1468_v14, -inf }
  0xdf   : > { %v287_v50 = vmax.f32 %v285_v40, %v286_v49 }
  0xe0   : > { %v323_v51 = vpop.permute.xlu1 %322  ;;  %v320_v52 = vpop.permute.xlu0 %319 }
  0xe1   : > { %v288_v53 = vrot.slane %v287_v50, 4  ;;  %vm339_vm12 = vcmp.eq.s32.totalorder %v323_v51, 1  ;;  %vm338_vm15 = vcmp.eq.s32.totalorder %v320_v52, 1 }
  0xe2   : > { %v347_v7 = vsel %vm339_vm12, %v1487_v33, -inf  ;;  %v346_v8 = vsel %vm338_vm15, %v1480_v28, -inf }
  0xe3   : > { %v289_v62 = vmax.f32 %v287_v50, %v288_v53 }
  0xe4   : > { %v329_v54 = vpop.permute.xlu1 %328  ;;  %v326_v55 = vpop.permute.xlu0 %325 }
  0xe5   : > { %vm341_vm10 = vcmp.eq.s32.totalorder %v329_v54, 1  ;;  %vm340_vm11 = vcmp.eq.s32.totalorder %v326_v55, 1  ;;  %v290_v17 = vrot.slane %v289_v62, 2 }
  0xe6   : > { %v349_v58 = vsel %vm341_vm10, %v1474_v24, -inf  ;;  %v348_v59 = vsel %vm340_vm11, %v1477_v25, -inf }
  0xe7   : > { %v353_v60 = vmax.f32 %v345_v56, %v349_v58  ;;  %v352_v61 = vmax.f32 %v344_v57, %v348_v59  ;;  %v291_v3 = vmax.f32 %v289_v62, %v290_v17 }
  0xe8   : > { %v335_v63 = vpop.permute.xlu1 %334  ;;  %v332_v0 = vpop.permute.xlu0 %331 }
  0xe9   : > { %v356_v6 = vmax.f32 %v352_v61, %v353_v60  ;;  %vm343_vm0 = vcmp.eq.s32.totalorder %v335_v63, 1  ;;  %vm342_vm1 = vcmp.eq.s32.totalorder %v332_v0, 1  ;;  %v292_v1 = vrot.slane %v291_v3, 1 }
  0xea   : > { %v351_v11 = vsel %vm343_vm0, %v1490_v36, -inf  ;;  %v350_v12 = vsel %vm342_vm1, %v1493_v37, -inf  ;;  %vm793_vm1 = vcmask 1041408  }
  0xeb   : > { %v355_v15 = vmax.f32 %v347_v7, %v351_v11  ;;  %v354_v16 = vmax.f32 %v346_v8, %v350_v12  ;;  %v293_v45 = vmax.f32 %v291_v3, %v292_v1 }
  0xec   : > { %v388_v18 = vpop.permute.xlu1 %387  ;;  %v385_v19 = vpop.permute.xlu0 %384 }
  0xed   : > { %v357_v20 = vmax.f32 %v354_v16, %v355_v15  ;;  %vm408_vm2 = vcmp.eq.s32.totalorder %v388_v18, 1  ;;  %vm407_vm3 = vcmp.eq.s32.totalorder %v385_v19, 1 }
  0xee   : > { %v416_v26 = vsel %vm408_vm2, %v1471_v21, -inf  ;;  %v415_v27 = vsel %vm407_vm3, %v1468_v14, -inf }
  0xef   : > { %v358_v22 = vmax.f32 %v356_v6, %v357_v20 }
  0xf0   : > { %v394_v23 = vpop.permute.xlu1 %393  ;;  %v391_v2 = vpop.permute.xlu0 %390 }
  0xf1   : > { %v359_v4 = vrot.slane %v358_v22, 4  ;;  %vm410_vm6 = vcmp.eq.s32.totalorder %v394_v23, 1  ;;  %vm409_vm13 = vcmp.eq.s32.totalorder %v391_v2, 1 }
  0xf2   : > { %v418_v41 = vsel %vm410_vm6, %v1487_v33, -inf  ;;  %v417_v42 = vsel %vm409_vm13, %v1480_v28, -inf }
  0xf3   : > { %v360_v9 = vmax.f32 %v358_v22, %v359_v4 }
  0xf4   : > { %v400_v5 = vpop.permute.xlu1 %399  ;;  %v397_v10 = vpop.permute.xlu0 %396 }
  0xf5   : > { %v361_v13 = vrot.slane %v360_v9, 2  ;;  %vm412_vm4 = vcmp.eq.s32.totalorder %v400_v5, 1  ;;  %vm411_vm5 = vcmp.eq.s32.totalorder %v397_v10, 1 }
  0xf6   : > { %v420_v29 = vsel %vm412_vm4, %v1474_v24, -inf  ;;  %v419_v30 = vsel %vm411_vm5, %v1477_v25, -inf  ;;  %vm795_vm4 = vcmask 1042432  }
  0xf7   : > { %v362_v31 = vmax.f32 %v360_v9, %v361_v13  ;;  %v424_v32 = vmax.f32 %v416_v26, %v420_v29  ;;  %v423_v34 = vmax.f32 %v415_v27, %v419_v30 }
  0xf8   : > { %v406_v35 = vpop.permute.xlu1 %405  ;;  %v403_v38 = vpop.permute.xlu0 %402 }
  0xf9   : > { %v363_v39 = vrot.slane %v362_v31, 1  ;;  %v427_v40 = vmax.f32 %v423_v34, %v424_v32  ;;  %vm414_vm14 = vcmp.eq.s32.totalorder %v406_v35, 1  ;;  %vm413_vm8 = vcmp.eq.s32.totalorder %v403_v38, 1 }
  0xfa   : > { %v422_v43 = vsel %vm414_vm14, %v1490_v36, -inf  ;;  %v421_v44 = vsel %vm413_vm8, %v1493_v37, -inf }
  0xfb   : > { %v364_v46 = vmax.f32 %v362_v31, %v363_v39  ;;  %v426_v47 = vmax.f32 %v418_v41, %v422_v43  ;;  %v425_v48 = vmax.f32 %v417_v42, %v421_v44 }
  0xfc   : > { %v459_v49 = vpop.permute.xlu1 %458  ;;  %v456_v50 = vpop.permute.xlu0 %455 }
  0xfd   : > { %v792_v51 = vsel %vm791_vm7, %v293_v45, %v364_v46  ;;  %v428_v52 = vmax.f32 %v425_v48, %v426_v47  ;;  %vm479_vm9 = vcmp.eq.s32.totalorder %v459_v49, 1  ;;  %vm478_vm10 = vcmp.eq.s32.totalorder %v456_v50, 1 }
  0xfe   : > { %v487_v61 = vsel %vm479_vm9, %v1471_v21, -inf  ;;  %v486_v62 = vsel %vm478_vm10, %v1468_v14, -inf }
  0xff   : > { %v429_v53 = vmax.f32 %v427_v40, %v428_v52 }
 0x100   : > { %v465_v54 = vpop.permute.xlu1 %464  ;;  %v462_v55 = vpop.permute.xlu0 %461 }
 0x101   : > { %v430_v56 = vrot.slane %v429_v53, 4  ;;  %vm481_vm15 = vcmp.eq.s32.totalorder %v465_v54, 1  ;;  %vm480_vm0 = vcmp.eq.s32.totalorder %v462_v55, 1 }
 0x102   : > { %v489_v17 = vsel %vm481_vm15, %v1487_v33, -inf  ;;  %v488_v18 = vsel %vm480_vm0, %v1480_v28, -inf }
 0x103   : > { %v431_v57 = vmax.f32 %v429_v53, %v430_v56 }
 0x104   : > { %v471_v58 = vpop.permute.xlu1 %470  ;;  %v468_v59 = vpop.permute.xlu0 %467 }
 0x105   : > { %v432_v60 = vrot.slane %v431_v57, 2  ;;  %vm483_vm11 = vcmp.eq.s32.totalorder %v471_v58, 1  ;;  %vm482_vm12 = vcmp.eq.s32.totalorder %v468_v59, 1 }
 0x106   : > { %v491_v63 = vsel %vm483_vm11, %v1474_v24, -inf  ;;  %v490_v0 = vsel %vm482_vm12, %v1477_v25, -inf }
 0x107   : > { %v433_v6 = vmax.f32 %v431_v57, %v432_v60  ;;  %v495_v7 = vmax.f32 %v487_v61, %v491_v63  ;;  %v494_v8 = vmax.f32 %v486_v62, %v490_v0 }
 0x108   : > { %v477_v11 = vpop.permute.xlu1 %476  ;;  %v474_v12 = vpop.permute.xlu0 %473 }
 0x109   : > { %v434_v15 = vrot.slane %v433_v6, 1  ;;  %v498_v16 = vmax.f32 %v494_v8, %v495_v7  ;;  %vm485_vm2 = vcmp.eq.s32.totalorder %v477_v11, 1  ;;  %vm484_vm3 = vcmp.eq.s32.totalorder %v474_v12, 1 }
 0x10a   : > { %v493_v19 = vsel %vm485_vm2, %v1490_v36, -inf  ;;  %v492_v20 = vsel %vm484_vm3, %v1493_v37, -inf }
 0x10b   : > { %v435_v22 = vmax.f32 %v433_v6, %v434_v15  ;;  %v497_v3 = vmax.f32 %v489_v17, %v493_v19  ;;  %v496_v23 = vmax.f32 %v488_v18, %v492_v20 }
 0x10c   : > { %v530_v2 = vpop.permute.xlu1 %529  ;;  %v527_v4 = vpop.permute.xlu0 %526 }
 0x10d   : > { %v794_v9 = vsel %vm793_vm1, %v792_v51, %v435_v22  ;;  %v499_v1 = vmax.f32 %v496_v23, %v497_v3  ;;  %vm550_vm14 = vcmp.eq.s32.totalorder %v530_v2, 1  ;;  %vm549_vm8 = vcmp.eq.s32.totalorder %v527_v4, 1 }
 0x10e   : > { %v558_v55 = vsel %vm550_vm14, %v1471_v21, -inf  ;;  %v557_v56 = vsel %vm549_vm8, %v1468_v14, -inf }
 0x10f   : > { %v500_v5 = vmax.f32 %v498_v16, %v499_v1 }
 0x110   : > { %v536_v10 = vpop.permute.xlu1 %535  ;;  %v533_v13 = vpop.permute.xlu0 %532 }
 0x111   : > { %v501_v26 = vrot.slane %v500_v5, 4  ;;  %vm552_vm9 = vcmp.eq.s32.totalorder %v536_v10, 1  ;;  %vm551_vm10 = vcmp.eq.s32.totalorder %v533_v13, 1 }
 0x112   : > { %v560_v57 = vsel %vm552_vm9, %v1487_v33, -inf  ;;  %v559_v58 = vsel %vm551_vm10, %v1480_v28, -inf }
 0x113   : > { %v502_v27 = vmax.f32 %v500_v5, %v501_v26 }
 0x114   : > { %v542_v29 = vpop.permute.xlu1 %541  ;;  %v539_v30 = vpop.permute.xlu0 %538 }
 0x115   : > { %v503_v31 = vrot.slane %v502_v27, 2  ;;  %vm554_vm5 = vcmp.eq.s32.totalorder %v542_v29, 1  ;;  %vm553_vm6 = vcmp.eq.s32.totalorder %v539_v30, 1 }
 0x116   : > { %v562_v49 = vsel %vm554_vm5, %v1474_v24, -inf  ;;  %v561_v50 = vsel %vm553_vm6, %v1477_v25, -inf }
 0x117   : > { %v504_v32 = vmax.f32 %v502_v27, %v503_v31  ;;  %v566_v59 = vmax.f32 %v558_v55, %v562_v49  ;;  %v565_v60 = vmax.f32 %v557_v56, %v561_v50 }
 0x118   : > { %v548_v34 = vpop.permute.xlu1 %547  ;;  %v545_v35 = vpop.permute.xlu0 %544 }
 0x119   : > { %v505_v38 = vrot.slane %v504_v32, 1  ;;  %vm556_vm13 = vcmp.eq.s32.totalorder %v548_v34, 1  ;;  %vm555_vm7 = vcmp.eq.s32.totalorder %v545_v35, 1  ;;  %v569_v6 = vmax.f32 %v565_v60, %v566_v59 }
 0x11a   : > { %v564_v51 = vsel %vm556_vm13, %v1490_v36, -inf  ;;  %v563_v52 = vsel %vm555_vm7, %v1493_v37, -inf }
 0x11b   : > { %v506_v39 = vmax.f32 %v504_v32, %v505_v38  ;;  %v568_v61 = vmax.f32 %v560_v57, %v564_v51  ;;  %v567_v62 = vmax.f32 %v559_v58, %v563_v52 }
 0x11c   : > { %v601_v40 = vpop.permute.xlu1 %600  ;;  %v598_v41 = vpop.permute.xlu0 %597 }
 0x11d   : > { %v1525_v42 = vsel %vm795_vm4, %v794_v9, %v506_v39  ;;  %vm621_vm11 = vcmp.eq.s32.totalorder %v601_v40, 1  ;;  %vm620_vm12 = vcmp.eq.s32.totalorder %v598_v41, 1  ;;  %v570_v7 = vmax.f32 %v567_v62, %v568_v61 }
 0x11e   : > { %v629_v8 = vsel %vm621_vm11, %v1471_v21, -inf  ;;  %v628_v11 = vsel %vm620_vm12, %v1468_v14, -inf }
 0x11f   : > { %v571_v40 = vmax.f32 %v569_v6, %v570_v7 }
 0x120   : > { %v607_v43 = vpop.permute.xlu1 %606  ;;  %v604_v44 = vpop.permute.xlu0 %603 }
 0x121   : > { %vm623_vm3 = vcmp.eq.s32.totalorder %v607_v43, 1  ;;  %vm622_vm4 = vcmp.eq.s32.totalorder %v604_v44, 1 }
 0x122   : > { %v631_v20 = vsel %vm623_vm3, %v1487_v33, -inf  ;;  %v630_v22 = vsel %vm622_vm4, %v1480_v28, -inf }
 0x124   : > { %v613_v45 = vpop.permute.xlu1 %612  ;;  %v610_v46 = vpop.permute.xlu0 %609 }
 0x125   : > { %vm625_vm15 = vcmp.eq.s32.totalorder %v613_v45, 1  ;;  %vm624_vm0 = vcmp.eq.s32.totalorder %v610_v46, 1 }
 0x126   : > { %v633_v12 = vsel %vm625_vm15, %v1474_v24, -inf  ;;  %v632_v15 = vsel %vm624_vm0, %v1477_v25, -inf }
 0x127   : > { %v637_v9 = vmax.f32 %v629_v8, %v633_v12  ;;  %v636_v1 = vmax.f32 %v628_v11, %v632_v15 }
 0x128   : > { %v619_v47 = vpop.permute.xlu1 %618  ;;  %v616_v48 = vpop.permute.xlu0 %615 }
 0x129   : > { %vm627_vm1 = vcmp.eq.s32.totalorder %v619_v47, 1  ;;  %vm626_vm2 = vcmp.eq.s32.totalorder %v616_v48, 1  ;;  %v640_v44 = vmax.f32 %v636_v1, %v637_v9  ;;  %v572_v48 = vrot.slane %v571_v40, 4 }
 0x12a   : > { %v635_v16 = vsel %vm627_vm1, %v1490_v36, -inf  ;;  %v634_v17 = vsel %vm626_vm2, %v1493_v37, -inf }
 0x12b   : > { %v639_v3 = vmax.f32 %v631_v20, %v635_v16  ;;  %v638_v23 = vmax.f32 %v630_v22, %v634_v17 }
 0x12c   : > { %v672_v53 = vpop.permute.xlu1 %671  ;;  %v669_v54 = vpop.permute.xlu0 %668 }
 0x12d   : > { %vm692_vm5 = vcmp.eq.s32.totalorder %v672_v53, 1  ;;  %vm691_vm6 = vcmp.eq.s32.totalorder %v669_v54, 1  ;;  %v641_v35 = vmax.f32 %v638_v23, %v639_v3  ;;  %v573_v53 = vmax.f32 %v571_v40, %v572_v48 }
 0x12e   : > { %v700_v5 = vsel %vm692_vm5, %v1471_v21, -inf  ;;  %v699_v10 = vsel %vm691_vm6, %v1468_v14, -inf  ;;  %vm797_vm5 = vcmask 1043456   ;;  %vm799_vm6 = vcmask 1044480  }
 0x12f   : > { %v642_v47 = vmax.f32 %v640_v44, %v641_v35  ;;  %v574_v60 = vrot.slane %v573_v53, 2 }
 0x130   : > { %v678_v63 = vpop.permute.xlu1 %677  ;;  %v675_v0 = vpop.permute.xlu0 %674 }
 0x131   : > { %vm694_vm14 = vcmp.eq.s32.totalorder %v678_v63, 1  ;;  %vm693_vm8 = vcmp.eq.s32.totalorder %v675_v0, 1  ;;  %v643_v52 = vrot.slane %v642_v47, 4 }
 0x132   : > { %v702_v27 = vsel %vm694_vm14, %v1487_v33, -inf  ;;  %v701_v29 = vsel %vm693_vm8, %v1480_v28, -inf }
 0x133   : > { %v644_v59 = vmax.f32 %v642_v47, %v643_v52 }
 0x134   : > { %v684_v18 = vpop.permute.xlu1 %683  ;;  %v681_v19 = vpop.permute.xlu0 %680 }
 0x135   : > { %vm696_vm13 = vcmp.eq.s32.totalorder %v684_v18, 1  ;;  %vm695_vm7 = vcmp.eq.s32.totalorder %v681_v19, 1  ;;  %v575_v19 = vmax.f32 %v573_v53, %v574_v60 }
 0x136   : > { %v704_v2 = vsel %vm696_vm13, %v1474_v24, -inf  ;;  %v703_v4 = vsel %vm695_vm7, %v1477_v25, -inf  ;;  %vm801_vm13 = vcmask 1045504   ;;  %vm803_vm7 = vcmask 1046528  }
 0x137   : > { %v708_v30 = vmax.f32 %v700_v5, %v704_v2  ;;  %v707_v31 = vmax.f32 %v699_v10, %v703_v4 }
 0x138   : > { %v690_v13 = vpop.permute.xlu1 %689  ;;  %v687_v26 = vpop.permute.xlu0 %686 }
 0x139   : > { %vm698_vm9 = vcmp.eq.s32.totalorder %v690_v13, 1  ;;  %vm697_vm10 = vcmp.eq.s32.totalorder %v687_v26, 1  ;;  %v711_v46 = vmax.f32 %v707_v31, %v708_v30 }
 0x13a   : > { %v706_v32 = vsel %vm698_vm9, %v1490_v36, -inf  ;;  %v705_v34 = vsel %vm697_vm10, %v1493_v37, -inf }
 0x13b   : > { %v710_v38 = vmax.f32 %v702_v27, %v706_v32  ;;  %v709_v39 = vmax.f32 %v701_v29, %v705_v34  ;;  %v805_v29 = vld [vmem:[%s1168_s12] sm:$0xff] }
 0x13c   : > { %v743_v41 = vpop.permute.xlu1 %742  ;;  %v740_v43 = vpop.permute.xlu0 %739 }
 0x13d   : > { %v712_v45 = vmax.f32 %v709_v39, %v710_v38  ;;  %vm763_vm11 = vcmp.eq.s32.totalorder %v743_v41, 1  ;;  %vm762_vm12 = vcmp.eq.s32.totalorder %v740_v43, 1 }
 0x13e   : > { %v771_v62 = vsel %vm763_vm11, %v1471_v21, -inf  ;;  %v770_v63 = vsel %vm762_vm12, %v1468_v14, -inf  ;;  %v645_v21 = vrot.slane %v644_v59, 2 }
 0x13f   : > { %v713_v49 = vmax.f32 %v711_v46, %v712_v45 }
 0x140   : > { %v749_v50 = vpop.permute.xlu1 %748  ;;  %v746_v51 = vpop.permute.xlu0 %745  ;;  %v646_v20 = vmax.f32 %v644_v59, %v645_v21 }
 0x141   : > { %v714_v54 = vrot.slane %v713_v49, 4  ;;  %vm765_vm1 = vcmp.eq.s32.totalorder %v749_v50, 1  ;;  %vm764_vm2 = vcmp.eq.s32.totalorder %v746_v51, 1 }
 0x142   : > { %v647_v23 = vrot.slane %v646_v20, 1 }
 0x143   : > { %v715_v61 = vmax.f32 %v713_v49, %v714_v54 }
 0x144   : > { %v755_v55 = vpop.permute.xlu1 %754  ;;  %v752_v56 = vpop.permute.xlu0 %751  ;;  %v648_v9 = vmax.f32 %v646_v20, %v647_v23 }
 0x145   : > { %vm767_vm15 = vcmp.eq.s32.totalorder %v755_v55, 1  ;;  %vm766_vm0 = vcmp.eq.s32.totalorder %v752_v56, 1  ;;  %v716_v16 = vrot.slane %v715_v61, 2 }
 0x146   : > { %v775_v57 = vsel %vm767_vm15, %v1474_v24, -inf  ;;  %v774_v58 = vsel %vm766_vm0, %v1477_v25, -inf  ;;  %v773_v24 = vsel %vm765_vm1, %v1487_v33, -inf  ;;  %v772_v25 = vsel %vm764_vm2, %v1480_v28, -inf }
 0x147   : > { %v779_v7 = vmax.f32 %v771_v62, %v775_v57  ;;  %v778_v8 = vmax.f32 %v770_v63, %v774_v58  ;;  %v717_v33 = vmax.f32 %v715_v61, %v716_v16  ;;  %v576_v28 = vrot.slane %v575_v19, 1 }
 0x148   : > { %v761_v0 = vpop.permute.xlu1 %760  ;;  %v758_v6 = vpop.permute.xlu0 %757 }
 0x149   : > { %vm769_vm3 = vcmp.eq.s32.totalorder %v761_v0, 1  ;;  %vm768_vm4 = vcmp.eq.s32.totalorder %v758_v6, 1  ;;  %v782_v17 = vmax.f32 %v778_v8, %v779_v7  ;;  %v577_v4 = vmax.f32 %v575_v19, %v576_v28 }
 0x14a   : > { %v777_v11 = vsel %vm769_vm3, %v1490_v36, -inf  ;;  %v776_v12 = vsel %vm768_vm4, %v1493_v37, -inf  ;;  %v718_v37 = vrot.slane %v717_v33, 1 }
 0x14b   : > { %v781_v15 = vmax.f32 %v773_v24, %v777_v11  ;;  %v780_v14 = vmax.f32 %v772_v25, %v776_v12  ;;  %v798_v13 = vsel %vm797_vm5, %v1525_v42, %v577_v4 }
 0x14c   : > { %v719_v5 = vmax.f32 %v717_v33, %v718_v37  ;;  %v800_v27 = vsel %vm799_vm6, %v798_v13, %v648_v9 }
 0x14d   : > { %v783_v18 = vmax.f32 %v780_v14, %v781_v15 }
 0x14e   : > { %v802_v30 = vsel %vm801_vm13, %v800_v27, %v719_v5 }
 0x14f   : > { %v784_v22 = vmax.f32 %v782_v17, %v783_v18 }
 0x151   : > { %v785_v3 = vrot.slane %v784_v22, 4 }
 0x153   : > { %v786_v36 = vmax.f32 %v784_v22, %v785_v3 }
 0x155   : > { %v787_v2 = vrot.slane %v786_v36, 2 }
 0x157   : > { %v788_v1 = vmax.f32 %v786_v36, %v787_v2 }
 0x159   : > { %v789_v10 = vrot.slane %v788_v1, 1 }
 0x15b   : > { %v790_v26 = vmax.f32 %v788_v1, %v789_v10 }
 0x15d   : > { %v804_v31 = vsel %vm803_vm7, %v802_v30, %v790_v26 }
 0x15e   : > { %v806_v32 = vmax.f32 %v805_v29, %v804_v31 }
 0x160   : > { %807 = vst [vmem:[%s1168_s12] sm:$0xff] %v806_v32 }
 0x161   : > { %1006 = shalt.err (!%p1003_p8)
}
 0x162   : > { %s1007_s19 = scalar_lea.hbm %s1570_s29, 128  ;;  %s1011_s21 = scalar_lea.hbm %s1618_s5, 1664 }
 0x163   : > { %p1008_p9 = scmp.ne.s32.totalorder %s1570_s29, %s1007_s19  ;;  %p1012_p12 = scmp.lt.u32.totalorder %s1570_s29, %s1618_s5 }
 0x164   : > { %p1013_p13 = scmp.lt.u32.totalorder %s1011_s21, %s1007_s19  ;;  %p1015_p1 = scmp.lt.u32.totalorder %s1007_s19, %s1570_s29 }
 0x165   : > { %p1009_p10 = pnand %p1008_p9, %p1138_p5 }
 0x166   : > { %p1014_p0 = por %p1013_p13, %p1012_p12 }
 0x167   : > { %p1010_p11 = pneg %p1009_p10 }
 0x168   : > { %p1016_p2 = por %p1015_p1, %p1014_p0 }
 0x16a   : > { %p1017_p3 = pnand %p1016_p2, %p1010_p11 }
 0x16c   : > { %1020 = shalt.err (!%p1017_p3)
}
 0x16d   : > { %911 = dma.vmem_to_hbm [thread:$0]  (%p1138_p5), %s1572_s1, 128, %s1570_s29, %s809_s30  }
 0x16e PF: > { %p917_p4 = scmp.ge.s32.totalorder %s1057_s8, 2  ;;  %s835_s24 = sand.u32 1, %s1045_s6  }
 0x16f   : > { %s836_s25 = scalar_lea.sflag [#allocation7], %s835_s24 }
 0x170   : > { %p914_p6 = pnand %p917_p4, %p1143_p7 }
 0x172   : > { %1040 = dma.done.wait (!%p914_p6), %s836_s25, 128  }
 0x173   : > { %1042 = vsyncadd (!%p914_p6), %s836_s25, 4294967168  ;;  %p29_p8 = scmp.ge.s32.totalorder %s1129_s11, 18   ;;  %s1623_s6 = smov %s1049_s7 }
 0x174   : > { %s1624_s7 = smov %s1053_s2  ;;  %s1625_s2 = smov %s1150_s18 }
 0x175   : > { %s1626_s8 = smov %s1129_s11  ;;  %31 = sbr.rel (!%p29_p8) target bundleno = 38 (0x26), region = 70 }
 0x17c   :  { %841 = vsyncpa [#allocation7], 1 }
 0x17d   :  { %843 = vsyncpa [#allocation7 + $0x1], 1 }

</bundles_post_ra>
